<compile_context>
chip_gen: v7x
topology: tpu7x:2x2x1
jax: 0.10.0
libtpu: 0.0.40
codegen_flags: <defaults>
</compile_context>

<pallas_src>
import functools

import jax
import jax.numpy as jnp
from jax.experimental import pallas as pl
from jax.experimental.pallas import tpu as pltpu


def _soft_dice_kernel(p_ref, t_ref, out_ref, psum_ref, tsum_ref, isum_ref,
                      *, smooth, rows_total, block_rows, needs_row_mask):
    j = pl.program_id(1)  # reduction-tile index (batch index is program_id(0))

    @pl.when(j == 0)
    def _init():
        psum_ref[...] = jnp.zeros_like(psum_ref)
        tsum_ref[...] = jnp.zeros_like(tsum_ref)
        isum_ref[...] = jnp.zeros_like(isum_ref)

    # Cast in-kernel: inputs arrive in their native (possibly narrow) dtype.
    p = p_ref[0].astype(jnp.float32)      # (block_rows, 128)
    t = t_ref[0].astype(jnp.float32)

    if needs_row_mask:
        # The last row tile runs past the real array; zero invalid rows.
        # (A couple of VPU selects per vreg -- negligible under the HBM bound.)
        row = jax.lax.broadcasted_iota(jnp.int32, (block_rows, 128), 0) + j * block_rows
        valid = row < rows_total
        p = jnp.where(valid, p, 0.0)
        t = jnp.where(valid, t, 0.0)

    inter = p * t  # only 1 mul/element; fp/fn-style terms are never formed

    def _fold(x):
        # (TR,128) -> (TR//8, 8, 128): each (8,128) slab is one f32 vreg, so the
        # leading-axis sum is elementwise vreg adds on the VPU (no per-tile XLU
        # tree reduction).
        return jnp.sum(x.reshape(block_rows // 8, 8, 128), axis=0)

    psum_ref[...] += _fold(p)
    tsum_ref[...] += _fold(t)
    isum_ref[...] += _fold(inter)

    @pl.when(j == pl.num_programs(1) - 1)
    def _finalize():
        s1 = jnp.sum(psum_ref[...])
        s2 = jnp.sum(tsum_ref[...])
        si = jnp.sum(isum_ref[...])
        score = (2.0 * si + smooth) / (s1 + s2 + smooth)
        out_ref[...] = jnp.full(out_ref.shape, score, dtype=out_ref.dtype)


def _round_up(x, m):
    return (x + m - 1) // m * m


def _min_sublanes(dtype):
    # f32 -> 8, bf16 -> 16, int8/bool -> 32 (packed-dtype minimum tiling).
    return max(8, 32 // jnp.dtype(dtype).itemsize)


def soft_dice_loss(probs, targets, *, block_rows=1024):
    """Matches SoftDiceLoss.forward(probs, targets). Accepts native dtypes."""
    assert probs.shape == targets.shape
    smooth = 1.0
    n = probs.shape[0]
    lane = 128

    # view(num, -1)
    p = probs.reshape(n, -1)
    t = targets.reshape(n, -1)
    s = p.shape[1]

    min_sub = max(_min_sublanes(p.dtype), _min_sublanes(t.dtype))
    chunk = lane * min_sub
    s_pad = _round_up(s, chunk)
    if s_pad != s:
        # Fallback only (typical CT volume sizes never hit this path);
        # zero padding leaves sum(p), sum(t), sum(p*t) unchanged.
        p = jnp.pad(p, ((0, 0), (0, s_pad - s)))
        t = jnp.pad(t, ((0, 0), (0, s_pad - s)))
    rows = s_pad // lane
    p = p.reshape(n, rows, lane)
    t = t.reshape(n, rows, lane)

    # Tile rows: multiple of the dtype's min sublane count, never larger than rows.
    tr = _round_up(min(int(block_rows), rows), min_sub)
    num_r = pl.cdiv(rows, tr)
    needs_row_mask = (num_r * tr != rows)

    kernel = functools.partial(
        _soft_dice_kernel,
        smooth=float(smooth),
        rows_total=rows,
        block_rows=tr,
        needs_row_mask=needs_row_mask,
    )

    bytes_accessed = (p.size * p.dtype.itemsize
                      + t.size * t.dtype.itemsize
                      + n * lane * 4)
    cost = pl.CostEstimate(flops=5 * n * s_pad, transcendentals=0,
                           bytes_accessed=bytes_accessed)

    scores = pl.pallas_call(
        kernel,
        out_shape=jax.ShapeDtypeStruct((n, 1, lane), jnp.float32),
        grid_spec=pltpu.PrefetchScalarGridSpec(
            num_scalar_prefetch=0,
            grid=(n, num_r),
            in_specs=[
                pl.BlockSpec((1, tr, lane), lambda b, j: (b, j, 0)),
                pl.BlockSpec((1, tr, lane), lambda b, j: (b, j, 0)),
            ],
            out_specs=pl.BlockSpec((1, 1, lane), lambda b, j: (b, 0, 0)),
            scratch_shapes=[pltpu.VMEM((8, lane), jnp.float32)] * 3,
        ),
        compiler_params=pltpu.CompilerParams(
            dimension_semantics=("parallel", "arbitrary")),
        cost_estimate=cost,
    )(p, t)

    per_batch_score = scores[:, 0, 0]          # (n,) dice score per sample
    return 1.0 - jnp.sum(per_batch_score) / n  # score = 1 - score.sum()/num


def _reference(probs, targets):
    num = probs.shape[0]
    smooth = 1.0
    m1 = probs.reshape(num, -1).astype(jnp.float32)
    m2 = targets.reshape(num, -1).astype(jnp.float32)
    inter = jnp.sum(m1 * m2, axis=1)
    score = (2.0 * inter + smooth) / (jnp.sum(m1, axis=1) + jnp.sum(m2, axis=1) + smooth)
    return 1.0 - jnp.sum(score) / num


if __name__ == "__main__":
    key = jax.random.PRNGKey(0)

    def run_case(shape, p_dtype, t_dtype, block_rows, k):
        kp, kt = jax.random.split(k)
        probs = jax.nn.sigmoid(
            jax.random.normal(kp, shape, dtype=jnp.float32)).astype(p_dtype)
        targets = (jax.random.uniform(kt, shape) > 0.5).astype(t_dtype)
        out = jax.block_until_ready(soft_dice_loss(probs, targets, block_rows=block_rows))
        ref = jax.block_until_ready(_reference(probs, targets))
        assert jnp.allclose(out, ref, rtol=1e-5, atol=1e-6), (shape, out, ref)

    k0, k1, k2 = jax.random.split(key, 3)
    # multi-tile reduction + ragged last row tile (in-kernel mask), bf16 probs
    run_case((2, 1, 8, 16, 48), jnp.bfloat16, jnp.float32, 32, k0)
    # single tile, f32/f32, no masking / no padding
    run_case((2, 1, 8, 16, 16), jnp.float32, jnp.float32, 1024, k1)
    # odd spatial size that triggers the zero-pad fallback path
    run_case((2, 1, 3, 5, 7), jnp.float32, jnp.float32, 1024, k2)

    print("KERNEL_OK")
</pallas_src>

<mosaic_0001>
module attributes {stable_mosaic.version = 11 : i64} {
  func.func @_soft_dice_kernel(%arg0: i32, %arg1: i32, %arg2: memref<1x32x128xbf16, #tpu.memory_space<vmem>>, %arg3: memref<1x32x128xf32, #tpu.memory_space<vmem>>, %arg4: memref<1x1x128xf32, #tpu.memory_space<vmem>>, %arg5: memref<8x128xf32, #tpu.memory_space<vmem>>, %arg6: memref<8x128xf32, #tpu.memory_space<vmem>>, %arg7: memref<8x128xf32, #tpu.memory_space<vmem>>) attributes {dimension_semantics = [#tpu.dimension_semantics<parallel>, #tpu.dimension_semantics<arbitrary>], iteration_bounds = array<i64: 2, 2>, scalar_prefetch = 0 : i64, scratch_operands = 3 : i64, tpu.core_type = #tpu.core_type<tc>, window_params = [{transform_indices = @transform_0, window_bounds = array<i64: 1, 32, 128>}, {transform_indices = @transform_1, window_bounds = array<i64: 1, 32, 128>}, {transform_indices = @transform_2, window_bounds = array<i64: 1, 1, 128>}]} {
    %c0_i32 = arith.constant 0 : i32
    %0 = arith.cmpi eq, %arg1, %c0_i32 : i32
    %1 = arith.extui %0 : i1 to i32
    %c0_i32_0 = arith.constant 0 : i32
    %2 = arith.cmpi ne, %1, %c0_i32_0 : i32
    scf.if %2 {
      %cst_23 = arith.constant 0.000000e+00 : f32
      %37 = vector.broadcast %cst_23 : f32 to vector<8x128xf32>
      %c0_24 = arith.constant 0 : index
      %c0_25 = arith.constant 0 : index
      %38 = vector.load %arg5[%c0_24, %c0_25] : memref<8x128xf32, #tpu.memory_space<vmem>>, vector<8x128xf32>
      tpu.vector_store %arg5[%c0_24, %c0_25], %37 {strides = array<i32>} : memref<8x128xf32, #tpu.memory_space<vmem>>, vector<8x128xf32>,
      %cst_26 = arith.constant 0.000000e+00 : f32
      %39 = vector.broadcast %cst_26 : f32 to vector<8x128xf32>
      %c0_27 = arith.constant 0 : index
      %c0_28 = arith.constant 0 : index
      %40 = vector.load %arg6[%c0_27, %c0_28] : memref<8x128xf32, #tpu.memory_space<vmem>>, vector<8x128xf32>
      tpu.vector_store %arg6[%c0_27, %c0_28], %39 {strides = array<i32>} : memref<8x128xf32, #tpu.memory_space<vmem>>, vector<8x128xf32>,
      %cst_29 = arith.constant 0.000000e+00 : f32
      %41 = vector.broadcast %cst_29 : f32 to vector<8x128xf32>
      %c0_30 = arith.constant 0 : index
      %c0_31 = arith.constant 0 : index
      %42 = vector.load %arg7[%c0_30, %c0_31] : memref<8x128xf32, #tpu.memory_space<vmem>>, vector<8x128xf32>
      tpu.vector_store %arg7[%c0_30, %c0_31], %41 {strides = array<i32>} : memref<8x128xf32, #tpu.memory_space<vmem>>, vector<8x128xf32>,
    } else {
    }
    %c0 = arith.constant 0 : index
    %c0_1 = arith.constant 0 : index
    %c0_2 = arith.constant 0 : index
    %3 = vector.load %arg2[%c0, %c0_1, %c0_2] : memref<1x32x128xbf16, #tpu.memory_space<vmem>>, vector<1x32x128xbf16>
    %4 = vector.shape_cast %3 : vector<1x32x128xbf16> to vector<32x128xbf16>
    %5 = arith.extf %4 : vector<32x128xbf16> to vector<32x128xf32>
    %c0_3 = arith.constant 0 : index
    %c0_4 = arith.constant 0 : index
    %c0_5 = arith.constant 0 : index
    %6 = vector.load %arg3[%c0_3, %c0_4, %c0_5] : memref<1x32x128xf32, #tpu.memory_space<vmem>>, vector<1x32x128xf32>
    %7 = vector.shape_cast %6 : vector<1x32x128xf32> to vector<32x128xf32>
    %8 = tpu.iota {dimensions = array<i32: 0>} : vector<32x128xi32>
    %c32_i32 = arith.constant 32 : i32
    %9 = arith.muli %arg1, %c32_i32 : i32
    %10 = vector.broadcast %9 : i32 to vector<32x128xi32>
    %11 = arith.addi %8, %10 : vector<32x128xi32>
    %c48_i32 = arith.constant 48 : i32
    %12 = vector.broadcast %c48_i32 : i32 to vector<32x128xi32>
    %13 = arith.cmpi slt, %11, %12 : vector<32x128xi32>
    %cst = arith.constant 0.000000e+00 : f32
    %14 = vector.broadcast %cst : f32 to vector<32x128xf32>
    %15 = arith.select %13, %5, %14 : vector<32x128xi1>, vector<32x128xf32>
    %cst_6 = arith.constant 0.000000e+00 : f32
    %16 = vector.broadcast %cst_6 : f32 to vector<32x128xf32>
    %17 = arith.select %13, %7, %16 : vector<32x128xi1>, vector<32x128xf32>
    %18 = arith.mulf %15, %17 : vector<32x128xf32>
    %c0_7 = arith.constant 0 : index
    %c0_8 = arith.constant 0 : index
    %19 = vector.load %arg5[%c0_7, %c0_8] : memref<8x128xf32, #tpu.memory_space<vmem>>, vector<8x128xf32>
    %20 = vector.shape_cast %15 : vector<32x128xf32> to vector<4x8x128xf32>
    %cst_9 = arith.constant dense<0.000000e+00> : vector<8x128xf32>
    %21 = vector.multi_reduction <add>, %20, %cst_9 [0] : vector<4x8x128xf32> to vector<8x128xf32>
    %22 = arith.addf %19, %21 : vector<8x128xf32>
    %c0_10 = arith.constant 0 : index
    %c0_11 = arith.constant 0 : index
    %23 = vector.load %arg5[%c0_10, %c0_11] : memref<8x128xf32, #tpu.memory_space<vmem>>, vector<8x128xf32>
    tpu.vector_store %arg5[%c0_10, %c0_11], %22 {strides = array<i32>} : memref<8x128xf32, #tpu.memory_space<vmem>>, vector<8x128xf32>,
    %c0_12 = arith.constant 0 : index
    %c0_13 = arith.constant 0 : index
    %24 = vector.load %arg6[%c0_12, %c0_13] : memref<8x128xf32, #tpu.memory_space<vmem>>, vector<8x128xf32>
    %25 = vector.shape_cast %17 : vector<32x128xf32> to vector<4x8x128xf32>
    %cst_14 = arith.constant dense<0.000000e+00> : vector<8x128xf32>
    %26 = vector.multi_reduction <add>, %25, %cst_14 [0] : vector<4x8x128xf32> to vector<8x128xf32>
    %27 = arith.addf %24, %26 : vector<8x128xf32>
    %c0_15 = arith.constant 0 : index
    %c0_16 = arith.constant 0 : index
    %28 = vector.load %arg6[%c0_15, %c0_16] : memref<8x128xf32, #tpu.memory_space<vmem>>, vector<8x128xf32>
    tpu.vector_store %arg6[%c0_15, %c0_16], %27 {strides = array<i32>} : memref<8x128xf32, #tpu.memory_space<vmem>>, vector<8x128xf32>,
    %c0_17 = arith.constant 0 : index
    %c0_18 = arith.constant 0 : index
    %29 = vector.load %arg7[%c0_17, %c0_18] : memref<8x128xf32, #tpu.memory_space<vmem>>, vector<8x128xf32>
    %30 = vector.shape_cast %18 : vector<32x128xf32> to vector<4x8x128xf32>
    %cst_19 = arith.constant dense<0.000000e+00> : vector<8x128xf32>
    %31 = vector.multi_reduction <add>, %30, %cst_19 [0] : vector<4x8x128xf32> to vector<8x128xf32>
    %32 = arith.addf %29, %31 : vector<8x128xf32>
    %c0_20 = arith.constant 0 : index
    %c0_21 = arith.constant 0 : index
    %33 = vector.load %arg7[%c0_20, %c0_21] : memref<8x128xf32, #tpu.memory_space<vmem>>, vector<8x128xf32>
    tpu.vector_store %arg7[%c0_20, %c0_21], %32 {strides = array<i32>} : memref<8x128xf32, #tpu.memory_space<vmem>>, vector<8x128xf32>,
    %c1_i32 = arith.constant 1 : i32
    %34 = arith.cmpi eq, %arg1, %c1_i32 : i32
    %35 = arith.extui %34 : i1 to i32
    %c0_i32_22 = arith.constant 0 : i32
    %36 = arith.cmpi ne, %35, %c0_i32_22 : i32
    scf.if %36 {
      %c0_23 = arith.constant 0 : index
      %c0_24 = arith.constant 0 : index
      %37 = vector.load %arg5[%c0_23, %c0_24] : memref<8x128xf32, #tpu.memory_space<vmem>>, vector<8x128xf32>
      %38 = vector.shape_cast %37 : vector<8x128xf32> to vector<1x8x128xf32>
      %cst_25 = arith.constant dense<0.000000e+00> : vector<1xf32>
      %39 = vector.multi_reduction <add>, %38, %cst_25 [1, 2] : vector<1x8x128xf32> to vector<1xf32>
      %40 = vector.shape_cast %39 : vector<1xf32> to vector<1x1x1xf32>
      %41 = vector.extract %40[0, 0, 0] : f32 from vector<1x1x1xf32>
      %c0_26 = arith.constant 0 : index
      %c0_27 = arith.constant 0 : index
      %42 = vector.load %arg6[%c0_26, %c0_27] : memref<8x128xf32, #tpu.memory_space<vmem>>, vector<8x128xf32>
      %43 = vector.shape_cast %42 : vector<8x128xf32> to vector<1x8x128xf32>
      %cst_28 = arith.constant dense<0.000000e+00> : vector<1xf32>
      %44 = vector.multi_reduction <add>, %43, %cst_28 [1, 2] : vector<1x8x128xf32> to vector<1xf32>
      %45 = vector.shape_cast %44 : vector<1xf32> to vector<1x1x1xf32>
      %46 = vector.extract %45[0, 0, 0] : f32 from vector<1x1x1xf32>
      %c0_29 = arith.constant 0 : index
      %c0_30 = arith.constant 0 : index
      %47 = vector.load %arg7[%c0_29, %c0_30] : memref<8x128xf32, #tpu.memory_space<vmem>>, vector<8x128xf32>
      %48 = vector.shape_cast %47 : vector<8x128xf32> to vector<1x8x128xf32>
      %cst_31 = arith.constant dense<0.000000e+00> : vector<1xf32>
      %49 = vector.multi_reduction <add>, %48, %cst_31 [1, 2] : vector<1x8x128xf32> to vector<1xf32>
      %50 = vector.shape_cast %49 : vector<1xf32> to vector<1x1x1xf32>
      %51 = vector.extract %50[0, 0, 0] : f32 from vector<1x1x1xf32>
      %cst_32 = arith.constant 2.000000e+00 : f32
      %52 = arith.mulf %cst_32, %51 : f32
      %cst_33 = arith.constant 1.000000e+00 : f32
      %53 = arith.addf %52, %cst_33 : f32
      %54 = arith.addf %41, %46 : f32
      %cst_34 = arith.constant 1.000000e+00 : f32
      %55 = arith.addf %54, %cst_34 : f32
      %56 = arith.divf %53, %55 : f32
      %57 = vector.broadcast %56 : f32 to vector<1x1x128xf32>
      %c0_35 = arith.constant 0 : index
      %c0_36 = arith.constant 0 : index
      %c0_37 = arith.constant 0 : index
      %58 = vector.load %arg4[%c0_35, %c0_36, %c0_37] : memref<1x1x128xf32, #tpu.memory_space<vmem>>, vector<1x1x128xf32>
      tpu.vector_store %arg4[%c0_35, %c0_36, %c0_37], %57 {strides = array<i32>} : memref<1x1x128xf32, #tpu.memory_space<vmem>>, vector<1x1x128xf32>,
    } else {
    }
    return
  }
  func.func @transform_0(%arg0: i32, %arg1: i32) -> (i32, i32, i32) {
    %c0_i32 = arith.constant 0 : i32
    %c0_i32_0 = arith.constant 0 : i32
    return %arg0, %arg1, %c0_i32 : i32, i32, i32
  }
  func.func @transform_1(%arg0: i32, %arg1: i32) -> (i32, i32, i32) {
    %c0_i32 = arith.constant 0 : i32
    %c0_i32_0 = arith.constant 0 : i32
    return %arg0, %arg1, %c0_i32 : i32, i32, i32
  }
  func.func @transform_2(%arg0: i32, %arg1: i32) -> (i32, i32, i32) {
    %c0_i32 = arith.constant 0 : i32
    %c0_i32_0 = arith.constant 0 : i32
    %c0_i32_1 = arith.constant 0 : i32
    return %arg0, %c0_i32, %c0_i32_0 : i32, i32, i32
  }
}

</mosaic_0001>

<bundles_post_ra>
// kernel: tpu_custom_call.1
= control target key start
LH: loop header
LB: loop body
LE: loop exit
PB: predicated region body
PF: predicated region fallthrough
CT: control target
= control target key end

     0   :  { %7 = vsyncpa [#allocation6], 0  ;;  %s1103_s0 = inlined_call_operand.hbm [shape: bf16[2,48,128], index: 0, kind: input, shape index: {}]   ;;  %s1104_s1 = inlined_call_operand.hbm [shape: f32[2,48,128], index: 1, kind: input, shape index: {}]   ;;  %s1105_s2 = inlined_call_operand.hbm [shape: f32[2,1,128], index: 2, kind: output, shape index: {}]  }
   0x1   :  { %9 = vsyncpa [#allocation6 + $0x1], 0 }
   0x2   :  { %10 = vsyncpa [#allocation9], 0 }
   0x3   :  { %12 = vsyncpa [#allocation9 + $0x1], 0 }
   0x4   :  { %13 = vsyncpa [#allocation7], 0 }
   0x5   :  { %15 = vsyncpa [#allocation7 + $0x1], 0  ;;  %s827_s9 = smov 0   ;;  %s829_s10 = smov 0  }
   0x6   :  { %s831_s11 = smov 0   ;;  %s833_s12 = smov 0  }
   0x7   :  { %s835_s13 = smov 0   ;;  %s837_s14 = smov 0  }
   0x8   :  { %s839_s15 = smov 0   ;;  %s841_s16 = smov 0  }
   0x9   :  { %s843_s17 = smov 0   ;;  %s845_s18 = smov 0  }
   0xa   :  { %s847_s19 = smov 0  }
   0xb LB: > { %s470_s20 = sadd.s32 4294967295, %s802_s19   ;;  %s471_s21 = sadd.s32 4294967294, %s802_s19   ;;  %s802_s19 = sphi %s847_s19, %s21_s19   ;;  %s798_s18 = sphi %s845_s18, %s1132_s18   ;;  %s794_s17 = sphi %s843_s17, %s1131_s17   ;;  %s790_s16 = sphi %s841_s16, %s1130_s16   ;;  %s786_s15 = sphi %s839_s15, %s1129_s15   ;;  %s782_s14 = sphi %s837_s14, %s1128_s14   ;;  %s778_s13 = sphi %s835_s13, %s1127_s13   ;;  %s774_s12 = sphi %s833_s12, %s1126_s12   ;;  %s770_s11 = sphi %s831_s11, %s1125_s11   ;;  %s766_s10 = sphi %s829_s10, %s1124_s10   ;;  %s762_s9 = sphi %s827_s9, %s1123_s9  }
   0xc   : > { %s30_s22 = sadd.s32 1, %s794_s17  ;;  %s33_s23 = sadd.s32 1, %s798_s18 }
   0xd   : > { %p31_p0 = scmp.ge.s32.totalorder %s30_s22, 2  ;;  %s42_s24 = sadd.s32 1, %s782_s14 }
   0xe   : > { %p49_p1 = scmp.ne.s32.totalorder %s782_s14, %s778_s13  ;;  %p50_p2 = scmp.eq.s32.totalorder %s802_s19, 0 }
   0xf   : > { %s1134_s22 = smov (%p31_p0, %s30_s22), 0  ;;  %s1136_s23 = smov (!%p31_p0, %s33_s23), %s798_s18 }
  0x10   : > { %1109 = sst [smem:[#allocation14_spill]] %s1134_s22  ;;  %s38_s25 = ssub.s32 %s794_s17, %s1134_s22 }
  0x11   : > { %p893_p3 = por %p50_p2, %p49_p1  ;;  %p35_p4 = scmp.ge.s32.totalorder %s1136_s23, 2 }
  0x12   : > { %p55_p5 = scmp.ne.s32.totalorder %s778_s13, %s774_s12  ;;  %p56_p6 = scmp.eq.s32.totalorder %s470_s20, 0 }
  0x13   : > { %s96_s27 = sadd.s32 1, %s770_s11  ;;  %s1138_s23 = smov (%p35_p4, %s1136_s23), 0 }
  0x14   : > { %1111 = sst [smem:[#allocation15_spill]] %s1138_s23  ;;  %p901_p7 = por %p56_p6, %p55_p5 }
  0x15   : > { %p106_p8 = scmp.ne.s32.totalorder %s770_s11, %s766_s10  ;;  %s37_s29 = ssub.s32 %s798_s18, %s1138_s23 }
  0x16   : > { %p107_p9 = scmp.eq.s32.totalorder %s470_s20, 3  ;;  %s39_s30 = sor.u32 %s38_s25, %s37_s29 }
  0x17   : > { %p94_p10 = scmp.eq.s32.totalorder %s37_s29, 0  ;;  %p40_p11 = scmp.eq.s32.totalorder %s39_s30, 0 }
  0x18   : > { %p909_p12 = por %p107_p9, %p106_p8  ;;  %p112_p13 = scmp.ne.s32.totalorder %s766_s10, %s762_s9 }
  0x19   : > { %s914_s4 = scalar_select %p94_p10, %s770_s11, %s96_s27  }
  0x1a   : > { %s1113_s3 = scalar_select %p909_p12, 1, 0 }
  0x1b   : > { %1114 = sst [smem:[#allocation16_spill]] %s914_s4  ;;  %p113_p0 = scmp.eq.s32.totalorder %s471_s21, 3 }
  0x1c   : > { %s917_s5 = scalar_select %p40_p11, %s782_s14, %s42_s24  }
  0x1d   : > { %p921_p1 = por %p113_p0, %p112_p13  ;;  %p473_p2 = scmp.ge.s32.totalorder %s802_s19, 4 }
  0x1e   : > { %1115 = sst [smem:[#allocation17_spill]] %s917_s5 }
  0x1f   : > { %s1116_s6 = scalar_select %p921_p1, 1, 0 }
  0x20   : > { %129 = sbr.rel (%p473_p2) target bundleno = 113 (0x71), region = 16 }
  0x27   : > { %132 = sbr.rel (!%p893_p3) target bundleno = 76 (0x4c), region = 20  ;;  %s133_s7 = sand.u32 (%p893_p3), 1, %s782_s14  }
  0x28   : > { %s475_s8 = sshll.u32 (%p893_p3), %s794_s17, 2  ;;  %s474_s12 = sshll.u32 (%p893_p3), %s133_s7, 4 }
  0x29   : > { %s139_s20 = ssub.s32 (%p893_p3), 6, %s475_s8  ;;  %s933_s25 = scalar_lea.sflag (%p893_p3), [#allocation6], %s133_s7 }
  0x2a   : > { %p140_p4 = scmp.lt.s32.totalorder (%p893_p3), %s139_s20, 4  ;;  %s137_s27 = scalar_lea.vmem (%p893_p3), [#allocation5], %s474_s12 }
  0x2e   : > { %s1140_s20 = smov (!%p140_p4, %s139_s20), 4 }
  0x2f   : > { %s930_s24 = sshll.u32 %s1140_s20, 6 }
  0x30   : > { %s144_s21 = ssub.s32 256, %s930_s24 }
  0x31   : > { %145 = vsyncadd %s933_s25, %s144_s21  ;;  %p477_p5 = scmp.ne.s32.totalorder %s930_s24, 0  ;;  %s506_s29 = smul.u32 6, %s798_s18 }
  0x32   : > { %s152_s30 = sshll.u32 %s137_s27, 4  ;;  %s938_s30 = int_to_ptr.vmem [resolvable:$true] %s152_s30 }
  0x33   : > { %s148_s23 = sadd.s32 %s506_s29, %s475_s8  ;;  %s624_s8 = scalar_lea.hbm %s1103_s0, 768 }
  0x34   : > { %s478_s22 = sshll.u32 %s148_s23, 6 }
  0x35   : > { %s943_s4 = scalar_lea.hbm %s1103_s0, %s478_s22 }
  0x36   : > { %s620_s7 = scalar_lea.hbm %s943_s4, %s930_s24  ;;  %p625_p10 = scmp.lt.u32.totalorder %s943_s4, %s1103_s0 }
  0x37   : > { %p621_p6 = scmp.ne.s32.totalorder %s943_s4, %s620_s7  ;;  %p626_p11 = scmp.lt.u32.totalorder %s624_s8, %s620_s7 }
  0x38   : > { %p628_p0 = scmp.lt.u32.totalorder %s620_s7, %s943_s4 }
  0x39   : > { %p622_p8 = pnand %p621_p6, %p477_p5  ;;  %p627_p13 = por %p626_p11, %p625_p10 }
  0x3b   : > { %p623_p9 = pneg %p622_p8  ;;  %p629_p2 = por %p628_p0, %p627_p13 }
  0x3d   : > { %p630_p4 = pnand %p629_p2, %p623_p9 }
  0x3f   : > { %633 = shalt.err (!%p630_p4)
}
  0x40   : > { %s634_s22 = scalar_lea.vmem %s938_s30, %s930_s24  ;;  %s804_s5 = smov [#allocation5]  }
  0x41   : > { %p635_p6 = scmp.ne.s32.totalorder %s938_s30, %s634_s22  ;;  %s638_s29 = sshll.u32 %s804_s5, 4  ;;  %s639_s29 = int_to_ptr.vmem [resolvable:$false] %s638_s29 }
  0x42   : > { %s640_s20 = scalar_lea.vmem %s639_s29, 512  ;;  %p641_p12 = scmp.lt.s32.totalorder %s938_s30, %s639_s29 }
  0x43   : > { %p636_p8 = pnand %p635_p6, %p477_p5  ;;  %p642_p10 = scmp.lt.s32.totalorder %s640_s20, %s634_s22 }
  0x45   : > { %p637_p1 = pneg %p636_p8  ;;  %p643_p11 = por %p642_p10, %p641_p12 }
  0x47   : > { %p644_p13 = pnand %p643_p11, %p637_p1 }
  0x49   : > { %647 = shalt.err (!%p644_p13)
}
  0x4a   : > { %s805_s7 = smov 64   ;;  %s806_s12 = smov 4  }
  0x4b   : > { %158 = dma.hbm_to_vmem [thread:$0]  (%p477_p5), %s943_s4, %s930_s24, %s938_s30, %s933_s25, %s805_s7, %s805_s7, %s806_s12  }
  0x4c PF: > { %161 = sbr.rel (!%p893_p3) target bundleno = 113 (0x71), region = 24  ;;  %s162_s21 = sand.u32 (%p893_p3), 1, %s782_s14  }
  0x4d   : > { %s482_s8 = sshll.u32 (%p893_p3), %s794_s17, 2  ;;  %s481_s27 = sshll.u32 (%p893_p3), %s162_s21, 5 }
  0x4e   : > { %s168_s23 = ssub.s32 (%p893_p3), 6, %s482_s8  ;;  %s977_s29 = scalar_lea.sflag (%p893_p3), [#allocation9], %s162_s21 }
  0x4f   : > { %p169_p12 = scmp.lt.s32.totalorder (%p893_p3), %s168_s23, 4  ;;  %s166_s4 = scalar_lea.vmem (%p893_p3), [#allocation8], %s481_s27 }
  0x53   : > { %s1142_s23 = smov (!%p169_p12, %s168_s23), 4 }
  0x54   : > { %s974_s22 = sshll.u32 %s1142_s23, 7 }
  0x55   : > { %s173_s5 = ssub.s32 512, %s974_s22 }
  0x56   : > { %174 = vsyncadd %s977_s29, %s173_s5  ;;  %p484_p3 = scmp.ne.s32.totalorder %s974_s22, 0  ;;  %s507_s26 = smul.u32 6, %s798_s18 }
  0x57   : > { %s181_s24 = sshll.u32 %s166_s4, 4  ;;  %s982_s24 = int_to_ptr.vmem [resolvable:$true] %s181_s24 }
  0x58   : > { %s177_s25 = sadd.s32 %s507_s26, %s482_s8  ;;  %s652_s8 = scalar_lea.hbm %s1104_s1, 1536 }
  0x59   : > { %s485_s30 = sshll.u32 %s177_s25, 7 }
  0x5a   : > { %s987_s12 = scalar_lea.hbm %s1104_s1, %s485_s30 }
  0x5b   : > { %s648_s21 = scalar_lea.hbm %s987_s12, %s974_s22  ;;  %p653_p0 = scmp.lt.u32.totalorder %s987_s12, %s1104_s1 }
  0x5c   : > { %p649_p1 = scmp.ne.s32.totalorder %s987_s12, %s648_s21  ;;  %p654_p2 = scmp.lt.u32.totalorder %s652_s8, %s648_s21 }
  0x5d   : > { %p656_p6 = scmp.lt.u32.totalorder %s648_s21, %s987_s12 }
  0x5e   : > { %p650_p5 = pnand %p649_p1, %p484_p3  ;;  %p655_p4 = por %p654_p2, %p653_p0 }
  0x60   : > { %p651_p9 = pneg %p650_p5  ;;  %p657_p8 = por %p656_p6, %p655_p4 }
  0x62   : > { %p658_p10 = pnand %p657_p8, %p651_p9 }
  0x64   : > { %661 = shalt.err (!%p658_p10)
}
  0x65   : > { %s662_s26 = scalar_lea.vmem %s982_s24, %s974_s22  ;;  %s807_s25 = smov [#allocation8]  }
  0x66   : > { %p663_p11 = scmp.ne.s32.totalorder %s982_s24, %s662_s26  ;;  %s666_s30 = sshll.u32 %s807_s25, 4  ;;  %s667_s30 = int_to_ptr.vmem [resolvable:$false] %s666_s30 }
  0x67   : > { %s668_s20 = scalar_lea.vmem %s667_s30, 1024  ;;  %p669_p1 = scmp.lt.s32.totalorder %s982_s24, %s667_s30 }
  0x68   : > { %p664_p13 = pnand %p663_p11, %p484_p3  ;;  %p670_p5 = scmp.lt.s32.totalorder %s668_s20, %s662_s26 }
  0x6a   : > { %p665_p12 = pneg %p664_p13  ;;  %p671_p0 = por %p670_p5, %p669_p1 }
  0x6c   : > { %p672_p2 = pnand %p671_p0, %p665_p12 }
  0x6e   : > { %675 = shalt.err (!%p672_p2)
}
  0x6f   : > { %s808_s7 = smov 128   ;;  %s809_s21 = smov 8  }
  0x70   : > { %187 = dma.hbm_to_vmem [thread:$0]  (%p484_p3), %s987_s12, %s974_s22, %s982_s24, %s977_s29, %s808_s7, %s808_s7, %s809_s21  }
  0x71 PF: > { %p488_p9 = scmp.ge.s32.totalorder %s802_s19, 1  ;;  %p189_p4 = scmp.lt.s32.totalorder %s802_s19, 5 }
  0x73   : > { %p190_p6 = pnand %p488_p9, %p189_p4 }
  0x74   : > { %s195_s27 = sand.u32 (!%p190_p6), 1, %s778_s13  }
  0x75   : > { %193 = sbr.rel (%p190_p6) target bundleno = 466 (0x1d2), region = 28  ;;  %s489_s23 = sshll.u32 (!%p190_p6), %s195_s27, 4 }
  0x76   : > { %s196_s8 = scalar_lea.sflag (!%p190_p6), [#allocation6], %s195_s27  ;;  %s199_s5 = scalar_lea.vmem (!%p190_p6), [#allocation5], %s489_s23 }
  0x7c   : > { %749 = dma.done.wait (%p901_p7), %s196_s8, 256  }
  0x7d   : > { %751 = vsyncadd (%p901_p7), %s196_s8, 4294967040  ;;  %s490_s22 = sshll.u32 %s195_s27, 5  ;;  %s205_s29 = scalar_lea.sflag [#allocation9], %s195_s27 }
  0x7e   : > { %s1021_s24 = scalar_lea.vmem [#allocation8], %s490_s22 }
  0x7f   : > { %753 = dma.done.wait (%p901_p7), %s205_s29, 512  }
  0x80   : > { %755 = vsyncadd (%p901_p7), %s205_s29, 4294966784  ;;  %s231_s12 = sand.u32 1, %s766_s10   ;;  %p491_p3 = scmp.ne.s32.totalorder %s786_s15, 0 }
  0x81   : > { %s1030_s4 = scalar_lea.vmem [#allocation10], %s231_s12  ;;  %v810_v0 = vmov (!%p491_p3), 0.0  }
  0x82   : > { %246 = sbr.rel (%p491_p3) target bundleno = 137 (0x89), region = 40  ;;  %247 = vst [vmem:[#allocation2] sm:$0xff] (!%p491_p3), %v810_v0  ;;  %248 = vst [vmem:[#allocation3] sm:$0xff] (!%p491_p3), %v810_v0 }
  0x83   : > { %249 = vst [vmem:[#allocation4] sm:$0xff] (!%p491_p3), %v810_v0 }
  0x89 PF: > { %v498_v1 = vld [vmem:[%s199_s5] sm:$0xff]   ;;  %v262_v2 = vlaneseq  ;;  %s492_s28 = sshll.u32 %s786_s15, 5  ;;  %v505_v3 = vld [vmem:[%s199_s5 + $0x8] sm:$0xff]   ;;  %p493_p7 = scmp.ne.s32.totalorder %s786_s15, 1 }
  0x8a   : > { %v268_v5 = vstv %s492_s28  ;;  %v499_v6 = vunpack.c.l.bf16 %v498_v1  ;;  %v258_v11 = vld [vmem:[%s1021_s24] sm:$0xff]  ;;  %v500_v12 = vunpack.c.h.bf16 %v498_v1  ;;  %v503_v13 = vunpack.c.l.bf16 %v505_v3  ;;  %v259_v18 = vld [vmem:[%s1021_s24 + $0x8] sm:$0xff]  ;;  %v260_v20 = vld [vmem:[%s1021_s24 + $0x10] sm:$0xff] }
  0x8b   : > { %v263_v4 = vshrl.u32 %v262_v2, 7  ;;  %v504_v14 = vunpack.c.h.bf16 %v505_v3  ;;  %v261_v21 = vld [vmem:[%s1021_s24 + $0x18] sm:$0xff]  ;;  %v289_v36 = vld [vmem:[#allocation2] sm:$0xff]  ;;  %v295_v37 = vld [vmem:[#allocation3] sm:$0xff] }
  0x8c   : > { %v301_v45 = vld [vmem:[#allocation4] sm:$0xff] }
  0x8d   : > { %v264_v7 = vadd.s32 8, %v263_v4  ;;  %v265_v8 = vadd.s32 16, %v263_v4  ;;  %v266_v9 = vadd.s32 24, %v263_v4  ;;  %v269_v10 = vadd.s32 %v268_v5, %v263_v4 }
  0x8f   : > { %v270_v15 = vadd.s32 %v268_v5, %v264_v7  ;;  %v271_v16 = vadd.s32 %v268_v5, %v265_v8  ;;  %v272_v17 = vadd.s32 %v268_v5, %v266_v9  ;;  %vm273_vm0 = vcmp.lt.s32.totalorder %v269_v10, 48 }
  0x90   : > { %v277_v19 = vsel %vm273_vm0, %v499_v6, 0.0  ;;  %v281_v22 = vsel %vm273_vm0, %v258_v11, 0.0 }
  0x91   : > { %vm274_vm1 = vcmp.lt.s32.totalorder %v270_v15, 48  ;;  %vm275_vm2 = vcmp.lt.s32.totalorder %v271_v16, 48  ;;  %vm276_vm3 = vcmp.lt.s32.totalorder %v272_v17, 48  ;;  %v285_v23 = vmul.f32 %v281_v22, %v277_v19 }
  0x92   : > { %v278_v24 = vsel %vm274_vm1, %v500_v12, 0.0  ;;  %v279_v25 = vsel %vm275_vm2, %v503_v13, 0.0  ;;  %v280_v26 = vsel %vm276_vm3, %v504_v14, 0.0  ;;  %v282_v27 = vsel %vm274_vm1, %v259_v18, 0.0 }
  0x93   : > { %v290_v28 = vadd.f32 %v278_v24, %v277_v19  ;;  %v283_v29 = vsel %vm275_vm2, %v260_v20, 0.0  ;;  %v284_v30 = vsel %vm276_vm3, %v261_v21, 0.0  ;;  %v296_v31 = vadd.f32 %v282_v27, %v281_v22 }
  0x94   : > { %v286_v32 = vmul.f32 %v282_v27, %v278_v24  ;;  %v287_v33 = vmul.f32 %v283_v29, %v279_v25  ;;  %v288_v38 = vmul.f32 %v284_v30, %v280_v26 }
  0x95   : > { %v291_v34 = vadd.f32 %v290_v28, %v279_v25  ;;  %v297_v35 = vadd.f32 %v296_v31, %v283_v29 }
  0x96   : > { %v302_v39 = vadd.f32 %v286_v32, %v285_v23 }
  0x97   : > { %v292_v40 = vadd.f32 %v291_v34, %v280_v26  ;;  %v298_v41 = vadd.f32 %v297_v35, %v284_v30 }
  0x98   : > { %v303_v42 = vadd.f32 %v302_v39, %v287_v33  ;;  %310 = sbr.rel (%p493_p7) target bundleno = 441 (0x1b9), region = 44 }
  0x99   : > { %v293_v43 = vadd.f32 %v292_v40, %v289_v36  ;;  %v299_v44 = vadd.f32 %v298_v41, %v295_v37 }
  0x9a   : > { %v304_v46 = vadd.f32 %v303_v42, %v288_v38 }
  0x9b   : > { %294 = vst [vmem:[#allocation2] sm:$0xff] %v293_v43  ;;  %300 = vst [vmem:[#allocation3] sm:$0xff] %v299_v44 }
  0x9c   : > { %v305_v47 = vadd.f32 %v304_v46, %v301_v45 }
  0x9e   : > { %306 = vst [vmem:[#allocation4] sm:$0xff] %v305_v47 }
  0xa2   : > { %v311_v48 = vld [vmem:[#allocation2] sm:$0xff]  ;;  %v321_v50 = vld [vmem:[#allocation3] sm:$0xff] }
  0xa3   : > { %312 = vadd.xlane.f32.xlu0 %v311_v48 }
  0xa5   : > { %v331_v49 = vld [vmem:[#allocation4] sm:$0xff] }
  0xa6   : > { %332 = vadd.xlane.f32.xlu1 %v331_v49 }
  0xa7   : > { %322 = vadd.xlane.f32.xlu0 %v321_v50 }
 0x130   : > { %v313_v51 = vpop.xlane.xlu0 %312 }
 0x131   : > { %v314_v53 = vrot.slane %v313_v51, 4 }
 0x133   : > { %v333_v52 = vpop.xlane.xlu1 %332  ;;  %v315_v55 = vadd.f32 %v314_v53, %v313_v51 }
 0x134   : > { %v334_v54 = vrot.slane %v333_v52, 4  ;;  %v323_v57 = vpop.xlane.xlu0 %322 }
 0x135   : > { %v316_v58 = vrot.slane %v315_v55, 2  ;;  %v324_v59 = vrot.slane %v323_v57, 4 }
 0x136   : > { %v335_v56 = vadd.f32 %v334_v54, %v333_v52 }
 0x137   : > { %v325_v61 = vadd.f32 %v324_v59, %v323_v57  ;;  %v317_v62 = vadd.f32 %v316_v58, %v315_v55 }
 0x138   : > { %v336_v60 = vrot.slane %v335_v56, 2 }
 0x139   : > { %v326_v0 = vrot.slane %v325_v61, 2  ;;  %v318_v1 = vrot.slane %v317_v62, 1 }
 0x13a   : > { %v337_v63 = vadd.f32 %v336_v60, %v335_v56 }
 0x13b   : > { %v327_v3 = vadd.f32 %v326_v0, %v325_v61  ;;  %v319_v4 = vadd.f32 %v318_v1, %v317_v62 }
 0x13c   : > { %v338_v2 = vrot.slane %v337_v63, 1 }
 0x13d   : > { %508 = vpush %v319_v4  ;;  %v328_v5 = vrot.slane %v327_v3, 1 }
 0x13e   : > { %v339_v6 = vadd.f32 %v338_v2, %v337_v63 }
 0x13f   : > { %v329_v7 = vadd.f32 %v328_v5, %v327_v3 }
 0x141   : > { %510 = vpush %v329_v7 }
 0x142   : > { %512 = vpush %v339_v6 }
 0x16e   : > { %s509_s15 = spop %508 }
 0x172   : > { %s511_s26 = spop %510 }
 0x173   : > { %s343_s25 = sadd.f32 %s511_s26, %s509_s15  ;;  %s513_s20 = spop %512 }
 0x174   : > { %s341_s7 = smul.f32 2.0, %s513_s20 }
 0x175   : > { %s344_s30 = sadd.f32 1.0, %s343_s25 }
 0x176   : > { %s342_s21 = sadd.f32 1.0, %s341_s7 }
 0x177   : > { %v345_v8 = vstv %s344_s30 }
 0x178   : > { %618 = vrcp.f32 %v345_v8 }
 0x182   : > { %v619_v9 = vpop.eup %618 }
 0x183   : > { %514 = vpush %v619_v9 }
 0x1b4   : > { %s515_s27 = spop %514 }
 0x1b5   : > { %s348_s23 = smul.f32 %s515_s27, %s342_s21 }
 0x1b7   : > { %v349_v10 = vstv %s348_s23 }
 0x1b8   : > { %350 = vst [vmem:[%s1030_s4] sm:$0x1] %v349_v10 }
 0x1b9 PF: > { %s494_s8 = sshll.u32 %s790_s16, 4  ;;  %s364_s24 = sshll.u32 %s1030_s4, 4  ;;  %s365_s24 = int_to_ptr.vmem [resolvable:$true] %s364_s24 }
 0x1ba   : > { %s1044_s29 = scalar_lea.hbm %s1105_s2, %s494_s8  ;;  %s352_s28 = scalar_lea.sflag [#allocation7], %s231_s12 }
 0x1bb   : > { %s676_s15 = scalar_lea.vmem %s365_s24, 16  ;;  %p1117_p10 = scmp.ne.s32.totalorder %s1113_s3, 0 }
 0x1bc   : > { %p677_p8 = scmp.ne.s32.totalorder %s365_s24, %s676_s15  ;;  %s811_s26 = smov [#allocation10]  }
 0x1bd   : > { %s680_s25 = sshll.u32 %s811_s26, 4  ;;  %s681_s25 = int_to_ptr.vmem [resolvable:$false] %s680_s25 }
 0x1be   : > { %p678_p11 = pnand %p677_p8, %p1117_p10  ;;  %s682_s30 = scalar_lea.vmem %s681_s25, 32 }
 0x1bf   : > { %p683_p12 = scmp.lt.s32.totalorder %s365_s24, %s681_s25  ;;  %p684_p1 = scmp.lt.s32.totalorder %s682_s30, %s676_s15 }
 0x1c0   : > { %p679_p13 = pneg %p678_p11 }
 0x1c1   : > { %p685_p5 = por %p684_p1, %p683_p12 }
 0x1c3   : > { %p686_p0 = pnand %p685_p5, %p679_p13 }
 0x1c5   : > { %689 = shalt.err (!%p686_p0)
}
 0x1c6   : > { %s690_s16 = scalar_lea.hbm %s1044_s29, 16  ;;  %s694_s20 = scalar_lea.hbm %s1105_s2, 32 }
 0x1c7   : > { %p691_p2 = scmp.ne.s32.totalorder %s1044_s29, %s690_s16  ;;  %p695_p6 = scmp.lt.u32.totalorder %s1044_s29, %s1105_s2 }
 0x1c8   : > { %p696_p3 = scmp.lt.u32.totalorder %s694_s20, %s690_s16  ;;  %p698_p8 = scmp.lt.u32.totalorder %s690_s16, %s1044_s29 }
 0x1c9   : > { %p692_p9 = pnand %p691_p2, %p1117_p10 }
 0x1ca   : > { %p697_p7 = por %p696_p3, %p695_p6 }
 0x1cb   : > { %p693_p4 = pneg %p692_p9 }
 0x1cc   : > { %p699_p11 = por %p698_p8, %p697_p7 }
 0x1ce   : > { %p700_p13 = pnand %p699_p11, %p693_p4 }
 0x1d0   : > { %703 = shalt.err (!%p700_p13)
}
 0x1d1   : > { %518 = dma.vmem_to_hbm [thread:$0]  (%p1117_p10), %s365_s24, 16, %s1044_s29, %s352_s28  }
 0x1d2 PF: > { %p524_p12 = scmp.ge.s32.totalorder %s802_s19, 2  ;;  %s376_s27 = sand.u32 1, %s762_s9  }
 0x1d3   : > { %p1118_p1 = scmp.ne.s32.totalorder %s1116_s6, 0  ;;  %s377_s23 = scalar_lea.sflag [#allocation7], %s376_s27 }
 0x1d5   : > { %p521_p5 = pnand %p524_p12, %p1118_p1 }
 0x1d7   : > { %757 = dma.done.wait (!%p521_p5), %s377_s23, 16  }
 0x1d8   : > { %759 = vsyncadd (!%p521_p5), %s377_s23, 4294967280  ;;  %s21_s19 = sadd.s32 1, %s802_s19   ;;  %s1119_s8 = sld [smem:[#allocation16_spill]] }
 0x1d9   : > { %p18_p0 = scmp.ge.s32.totalorder %s21_s19, 6   ;;  %s1120_s3 = sld [smem:[#allocation17_spill]] }
 0x1da   : > { %s1121_s5 = sld [smem:[#allocation14_spill]]  ;;  %s1122_s22 = sld [smem:[#allocation15_spill]] }
 0x1db   : > { %s1123_s9 = smov %s766_s10  ;;  %s1124_s10 = smov %s770_s11 }
 0x1dc   : > { %s1126_s12 = smov %s778_s13  ;;  %s1127_s13 = smov %s782_s14 }
 0x1dd   : > { %s1129_s15 = smov %s794_s17  ;;  %s1130_s16 = smov %s798_s18 }
 0x1de   : > { %s1125_s11 = smov %s1119_s8  ;;  %20 = sbr.rel (!%p18_p0) target bundleno = 11 (0xb), region = 94 }
 0x1df   : > { %s1128_s14 = smov %s1120_s3 }
 0x1e0   : > { %s1131_s17 = smov %s1121_s5  ;;  %s1132_s18 = smov %s1122_s22 }
 0x1e5   :  { %381 = vsyncpa [#allocation6], 1 }
 0x1e6   :  { %383 = vsyncpa [#allocation6 + $0x1], 1 }
 0x1e7   :  { %384 = vsyncpa [#allocation9], 1 }
 0x1e8   :  { %386 = vsyncpa [#allocation9 + $0x1], 1 }
 0x1e9   :  { %387 = vsyncpa [#allocation7], 1 }
 0x1ea   :  { %389 = vsyncpa [#allocation7 + $0x1], 1 }

</bundles_post_ra>
